<compile_context>
chip_gen: v7x
topology: tpu7x:2x2x1
jax: 0.10.0
libtpu: 0.0.40
codegen_flags: <defaults>
</compile_context>

<pallas_src>
import jax
import jax.numpy as jnp
from jax.experimental import pallas as pl
from jax.experimental.pallas import tpu as pltpu

# --- mirror the module's vocab construction (deterministic, in-script) -------
embed_size = 8
sentences = ['pig cat animal', 'cat pig animal', 'orange apple fruitRiemann like fruit',
             'Riemann like orange and apple', 'Riemann is a cat',
             'sleep eat study action', 'Riemann like eating']
word_list = ' '.join(sentences).split()
vocab = sorted(set(word_list))   # sorted: run-to-run deterministic row meanings
vocab_size = len(vocab)

LANE = 128    # TPU lane width  (last dim of a vreg)
SUBLANE = 8   # f32 sublane count (second-to-last dim of a vreg)


def _round_up(n, m):
    return (n + m - 1) // m * m


def word2vec_kernel(x_ref, w_ref, v_ref, o_ref):
    # hidden = X @ W  -> [B_pad, E], f32 accumulation on the MXU
    hidden = jnp.dot(x_ref[...], w_ref[...], preferred_element_type=jnp.float32)
    # output = hidden @ V_pad -> [B_pad, V_pad]; V_pad is lane-dense (multiple of 128)
    o_ref[...] = jnp.dot(hidden, v_ref[...],
                         preferred_element_type=jnp.float32).astype(o_ref.dtype)


def word2vec_forward(x, w, v):
    """Forward of the Word2Vec module: (X @ W) @ V.

    x: [B, vocab_size], w: [vocab_size, E], v: [E, vocab_size] -> [B, vocab_size]
    """
    B, Vsz = x.shape
    E = w.shape[1]
    B_pad = _round_up(max(B, SUBLANE), SUBLANE)
    V_pad = _round_up(Vsz, LANE)

    # Zero-pad batch (sublane) dim of X and vocab (lane) dim of V so the kernel's
    # output tile is a dense [B_pad, V_pad] slab -> unmasked full-vreg stores.
    # Extra lanes/rows are exact zeros and are sliced off below.
    x_pad = jnp.zeros((B_pad, Vsz), x.dtype).at[:B, :].set(x)
    v_pad = jnp.zeros((E, V_pad), v.dtype).at[:, :Vsz].set(v)

    out_pad = pl.pallas_call(
        word2vec_kernel,
        out_shape=jax.ShapeDtypeStruct((B_pad, V_pad), jnp.float32),
        # No grid: a single kernel invocation; each operand is one full VMEM block.
        in_specs=[
            pl.BlockSpec(memory_space=pltpu.MemorySpace.VMEM),
            pl.BlockSpec(memory_space=pltpu.MemorySpace.VMEM),
            pl.BlockSpec(memory_space=pltpu.MemorySpace.VMEM),
        ],
        out_specs=pl.BlockSpec(memory_space=pltpu.MemorySpace.VMEM),
    )(x_pad, w, v_pad)

    return out_pad[:B, :Vsz]


if __name__ == "__main__":
    key = jax.random.PRNGKey(0)
    k_w, k_v, k_x = jax.random.split(key, 3)

    # Parameters (as in nn.Parameter(torch.randn(...))), deterministic init.
    W = jax.random.normal(k_w, (vocab_size, embed_size), dtype=jnp.float32)
    V = jax.random.normal(k_v, (embed_size, vocab_size), dtype=jnp.float32)

    # Example input: batch of one-hot vectors [batch_size, vocab_size],
    # matching the skip-gram input the module expects.
    batch_size = 4
    idx = jax.random.randint(k_x, (batch_size,), 0, vocab_size)
    X = jax.nn.one_hot(idx, vocab_size, dtype=jnp.float32)

    out = word2vec_forward(X, W, V)
    jax.block_until_ready(out)

    # Reference check in plain JAX.
    ref = (X @ W) @ V
    assert out.shape == (batch_size, vocab_size)
    assert jnp.allclose(out, ref, atol=1e-4, rtol=1e-4)

    print("KERNEL_OK")
</pallas_src>

<mosaic_0001>
module attributes {stable_mosaic.version = 11 : i64} {
  func.func @word2vec_kernel(%arg0: memref<8x17xf32, #tpu.memory_space<vmem>>, %arg1: memref<17x8xf32, #tpu.memory_space<vmem>>, %arg2: memref<8x128xf32, #tpu.memory_space<vmem>>, %arg3: memref<8x128xf32, #tpu.memory_space<vmem>>) attributes {dimension_semantics = [], scalar_prefetch = 0 : i64, scratch_operands = 0 : i64, tpu.core_type = #tpu.core_type<tc>} {
    %c0 = arith.constant 0 : index
    %c0_0 = arith.constant 0 : index
    %0 = vector.load %arg0[%c0, %c0_0] : memref<8x17xf32, #tpu.memory_space<vmem>>, vector<8x17xf32>
    %c0_1 = arith.constant 0 : index
    %c0_2 = arith.constant 0 : index
    %1 = vector.load %arg1[%c0_1, %c0_2] : memref<17x8xf32, #tpu.memory_space<vmem>>, vector<17x8xf32>
    %cst = arith.constant dense<0.000000e+00> : vector<8x8xf32>
    %2 = tpu.matmul %0, %1, %cst {dimension_numbers = #tpu.dot_dimension_numbers<[1], [0], [0], [1], [0, 0, 1, 1], [], []>} : vector<8x17xf32>, vector<17x8xf32>, vector<8x8xf32> -> vector<8x8xf32>
    %c0_3 = arith.constant 0 : index
    %c0_4 = arith.constant 0 : index
    %3 = vector.load %arg2[%c0_3, %c0_4] : memref<8x128xf32, #tpu.memory_space<vmem>>, vector<8x128xf32>
    %cst_5 = arith.constant dense<0.000000e+00> : vector<8x128xf32>
    %4 = tpu.matmul %2, %3, %cst_5 {dimension_numbers = #tpu.dot_dimension_numbers<[1], [0], [0], [1], [0, 0, 1, 1], [], []>} : vector<8x8xf32>, vector<8x128xf32>, vector<8x128xf32> -> vector<8x128xf32>
    %c0_6 = arith.constant 0 : index
    %c0_7 = arith.constant 0 : index
    %5 = vector.load %arg3[%c0_6, %c0_7] : memref<8x128xf32, #tpu.memory_space<vmem>>, vector<8x128xf32>
    tpu.vector_store %arg3[%c0_6, %c0_7], %4 {strides = array<i32>} : memref<8x128xf32, #tpu.memory_space<vmem>>, vector<8x128xf32>,
    return
  }
}

</mosaic_0001>

<bundles_post_ra>
// kernel: tpu_custom_call.1
= control target key start
LH: loop header
LB: loop body
LE: loop exit
PB: predicated region body
PF: predicated region fallthrough
CT: control target
= control target key end

     0   :  { %v241_v2 = vmov 0.0|0.0   ;;  %v242_v4 = vmov 0.0   ;;  %s292_s0 = inlined_call_operand.vmem [shape: f32[8,17], index: 0, kind: input, shape index: {}]   ;;  %s293_s1 = inlined_call_operand.vmem [shape: f32[17,8], index: 1, kind: input, shape index: {}]   ;;  %s294_s2 = inlined_call_operand.vmem [shape: f32[8,128], index: 2, kind: input, shape index: {}]   ;;  %s295_s3 = inlined_call_operand.hbm [shape: f32[8,128], index: 3, kind: output, shape index: {}]  }
   0x1   :  { %v16_v0 = vld [vmem:[%s293_s1] sm:$0xff]  ;;  %v17_v1 = vld [vmem:[%s293_s1 + $0x8] sm:$0xff]  ;;  %210 = vmatprep.subr.bf16.mxu0 %v241_v2  ;;  %205 = vmatprep.subr.mxu1 %v242_v4 }
   0x2   :  { %v211_v3 = vpack.c.bf16 %v17_v1, %v16_v0 }
   0x3   :  { %8 = vsyncpa [#allocation3], 0  ;;  %vm243_vm0 = vmmov 0   ;;  %v18_v5 = vld [vmem:[%s293_s1 + $0x10] sm:$0x1]  ;;  %vm23_vm1 = vcmask 1040384  }
   0x4   :  { %202 = vmatprep.mubr.msk.f32.mxu0 %vm243_vm0, %v242_v4  ;;  %207 = vmatprep.mubr.msk.f32.mxu1 %vm243_vm0, %v242_v4  ;;  %v15_v6 = vld [vmem:[%s292_s0] sm:$0xff]  ;;  %vm19_vm2 = vcmask 138240   ;;  %vm98_vm3 = vcmask 64512   ;;  %s244_s22 = smov [#allocation2]  }
   0x5   :  { %212 = vmatpush3.bf16.msra.mxu0 %v211_v3  ;;  %v97_v7 = vld [vmem:[%s294_s2] sm:$0xff]  ;;  %s179_s23 = sshll.u32 %s244_s22, 4  ;;  %s180_s23 = int_to_ptr.vmem [resolvable:$true] %s179_s23 }
   0x6   :  { %200 = vmatprep.subr.mxu0 %v242_v4  ;;  %206 = vmatpush3.msra.mxu1 %v97_v7  ;;  %s217_s1 = scalar_lea.vmem %s180_s23, 128  ;;  %p222_p1 = scmp.lt.s32.totalorder %s180_s23, %s180_s23 }
   0x7   :  { %p218_p0 = scmp.ne.s32.totalorder %s180_s23, %s217_s1  ;;  %p223_p2 = scmp.lt.s32.totalorder %s217_s1, %s217_s1 }
   0x9   :  { %201 = vmatpush3.msk.msra.mxu0 %vm23_vm1, %v18_v5  ;;  %p224_p3 = por %p223_p2, %p222_p1 }
   0xa   :  { %203 = vmatmul.mubr.msk.f32.vlgmr.msra.gmra.mrb[0].mxu0 %vm19_vm2, %v15_v6 }
   0xb   :  { %p225_p4 = pnand %p224_p3, %p218_p0 }
  0xdd   :  { %v93_v8 = vpop.f32.mrb[0].mxu0 }
  0xde   :  { %v204_v9 = vpop.f32.mrb[1].mxu0  ;;  %208 = vmatmul.mubr.msk.f32.vlgmr.msra.gmra.mrb[0].mxu1 %vm98_vm3, %v93_v8 }
 0x1b1   :  { %v168_v10 = vpop.f32.mrb[0].mxu1 }
 0x1b2   :  { %172 = vst [vmem:[#allocation2] sm:$0xff] %v168_v10  ;;  %v209_v11 = vpop.f32.mrb[1].mxu1 }
 0x1b3   :  { %228 = shalt.err (!%p225_p4)
}
 0x1b4   :  { %s229_s24 = scalar_lea.hbm %s295_s3, 128 }
 0x1b5   :  { %p230_p5 = scmp.ne.s32.totalorder %s295_s3, %s229_s24  ;;  %p233_p6 = scmp.lt.u32.totalorder %s229_s24, %s295_s3 }
 0x1b7   :  { %p235_p7 = pnand %p233_p6, %p230_p5 }
 0x1b9   :  { %238 = shalt.err (!%p235_p7)
}
 0x1ba   :  { %182 = dma.vmem_to_hbm [thread:$0]  %s180_s23, 128, %s295_s3, [#allocation3]  }
 0x1bb   :  { %239 = dma.done.wait [#allocation3], 128  }
 0x1bc   :  { %240 = vsyncadd [#allocation3], 4294967168 }
 0x1bd   :  { %186 = vsyncpa [#allocation3], 1 }

</bundles_post_ra>
